<compile_context>
chip_gen: v7x
topology: tpu7x:2x2x1
jax: 0.10.0
libtpu: 0.0.40
codegen_flags: <defaults>
</compile_context>

<pallas_src>
import jax
import jax.numpy as jnp
from jax.experimental import pallas as pl

# ----------------------------- model config ---------------------------------
B = 2          # batch
S = 8          # sequence length
D_MODEL = 32
D_INNER = 64
N_HEAD = 4
D_K = 8
D_V = 8
LN_EPS = 1e-6

K_OFF = N_HEAD * D_K          # start of K columns in fused QKV
V_OFF = 2 * N_HEAD * D_K      # start of V columns in fused QKV
QKV_W = 2 * N_HEAD * D_K + N_HEAD * D_V


# ------------------------------- kernel -------------------------------------
def encoder_layer_kernel(
    x_ref,        # [B*S, D]
    wqkv_ref,     # [D, 2*H*dk + H*dv]   (Q columns pre-scaled by 1/sqrt(dk))
    wo_ref,       # [H*dv, D]
    w1_ref,       # [D, D_inner]
    w2_ref,       # [D_inner, D]
    ln_ref,       # [4, D]  rows: ln1_g, ln1_b, ln2_g, ln2_b
    bias_ref,     # [2, D_inner]  row0: b1, row1: [b2 | zeros]
    out_ref,      # [B*S, D]
    attn_ref,     # [B, S, H*S]   (lane-dense attention probs; reshaped outside)
):
    x = x_ref[...]                                                     # [B*S, D] f32

    # Fused QKV projection for all tokens of all batches (one MXU push, lane width 96).
    qkv = jnp.dot(x, wqkv_ref[...], preferred_element_type=jnp.float32)

    wo = wo_ref[...]
    proj_rows = []
    # TODO(synk): slf_attn_mask=None path only; add masked_fill(-1e9) support if a mask is given.
    for b in range(B):                                # static unroll over batches
        r0 = b * S
        proj_b = jnp.zeros((S, D_MODEL), jnp.float32)
        attn_heads = []
        for h in range(N_HEAD):                       # static unroll over heads
            qh = qkv[r0:r0 + S, h * D_K:(h + 1) * D_K]                     # pre-scaled
            kh = qkv[r0:r0 + S, K_OFF + h * D_K:K_OFF + (h + 1) * D_K]
            vh = qkv[r0:r0 + S, V_OFF + h * D_V:V_OFF + (h + 1) * D_V]

            s = jnp.dot(qh, kh.T, preferred_element_type=jnp.float32)      # [S, S]
            m = jnp.max(s, axis=-1, keepdims=True)
            e = jnp.exp(s - m)
            # softmax divide on the EUP (otherwise-idle slot)
            p = e * pl.reciprocal(jnp.sum(e, axis=-1, keepdims=True), approx=True)
            attn_heads.append(p)

            hv = jnp.dot(p, vh, preferred_element_type=jnp.float32)        # [S, dv]
            # accumulate directly through the relevant rows of W_O (no head concat)
            proj_b = proj_b + jnp.dot(
                hv, wo[h * D_V:(h + 1) * D_V, :], preferred_element_type=jnp.float32)

        # one lane-dense store per batch: [S, H*S] (last dim 32)
        attn_ref[b] = jnp.concatenate(attn_heads, axis=-1)
        proj_rows.append(proj_b)

    proj = jnp.concatenate(proj_rows, axis=0)                              # [B*S, D]

    ln1_g = ln_ref[0:1, :]
    ln1_b = ln_ref[1:2, :]
    ln2_g = ln_ref[2:3, :]
    ln2_b = ln_ref[3:4, :]
    b1 = bias_ref[0:1, :]
    b2 = bias_ref[1:2, 0:D_MODEL]

    # residual + LayerNorm (post-norm, eps=1e-6, biased variance like PyTorch)
    r1 = proj + x
    mu1 = jnp.mean(r1, axis=-1, keepdims=True)
    var1 = jnp.mean((r1 - mu1) ** 2, axis=-1, keepdims=True)
    y1 = (r1 - mu1) * jax.lax.rsqrt(var1 + LN_EPS) * ln1_g + ln1_b

    # position-wise FFN on the full [B*S, *] slab (fuller MXU tiles, single stores)
    h1 = jnp.maximum(
        jnp.dot(y1, w1_ref[...], preferred_element_type=jnp.float32) + b1, 0.0)
    h2 = jnp.dot(h1, w2_ref[...], preferred_element_type=jnp.float32) + b2

    r2 = h2 + y1
    mu2 = jnp.mean(r2, axis=-1, keepdims=True)
    var2 = jnp.mean((r2 - mu2) ** 2, axis=-1, keepdims=True)
    y2 = (r2 - mu2) * jax.lax.rsqrt(var2 + LN_EPS) * ln2_g + ln2_b

    out_ref[...] = y2.astype(out_ref.dtype)


# ------------------------------- wrapper -------------------------------------
@jax.jit
def encoder_layer(x, params):
    """x: [B, S, D].  Returns (enc_output [B,S,D], enc_slf_attn [B,H,S,S])."""
    (wq, wk, wv, wo, ln1_g, ln1_b, w1, b1, w2, b2, ln2_g, ln2_b) = params

    # --- pack parameters (done in XLA outside the kernel; constant-folds under jit) ---
    scale = 1.0 / (D_K ** 0.5)
    wqkv = jnp.concatenate([wq * scale, wk, wv], axis=1)                  # [D, QKV_W]
    ln_slab = jnp.concatenate([ln1_g, ln1_b, ln2_g, ln2_b], axis=0)       # [4, D]
    b2_pad = jnp.concatenate(
        [b2, jnp.zeros((1, D_INNER - D_MODEL), jnp.float32)], axis=1)     # [1, D_inner]
    bias_slab = jnp.concatenate([b1, b2_pad], axis=0)                     # [2, D_inner]

    x2 = x.reshape(B * S, D_MODEL)

    out2, attn_flat = pl.pallas_call(
        encoder_layer_kernel,
        out_shape=(
            jax.ShapeDtypeStruct((B * S, D_MODEL), jnp.float32),
            jax.ShapeDtypeStruct((B, S, N_HEAD * S), jnp.float32),
        ),
    )(x2, wqkv, wo, w1, w2, ln_slab, bias_slab)

    out = out2.reshape(B, S, D_MODEL)
    attn = attn_flat.reshape(B, S, N_HEAD, S).transpose(0, 2, 1, 3)       # [B, H, S, S]
    return out, attn


def make_params(key):
    ks = jax.random.split(key, 8)
    scale = 0.05
    wq = scale * jax.random.normal(ks[0], (D_MODEL, N_HEAD * D_K), jnp.float32)
    wk = scale * jax.random.normal(ks[1], (D_MODEL, N_HEAD * D_K), jnp.float32)
    wv = scale * jax.random.normal(ks[2], (D_MODEL, N_HEAD * D_V), jnp.float32)
    wo = scale * jax.random.normal(ks[3], (N_HEAD * D_V, D_MODEL), jnp.float32)
    ln1_g = jnp.ones((1, D_MODEL), jnp.float32)
    ln1_b = jnp.zeros((1, D_MODEL), jnp.float32)
    w1 = scale * jax.random.normal(ks[4], (D_MODEL, D_INNER), jnp.float32)
    b1 = scale * jax.random.normal(ks[5], (1, D_INNER), jnp.float32)
    w2 = scale * jax.random.normal(ks[6], (D_INNER, D_MODEL), jnp.float32)
    b2 = scale * jax.random.normal(ks[7], (1, D_MODEL), jnp.float32)
    ln2_g = jnp.ones((1, D_MODEL), jnp.float32)
    ln2_b = jnp.zeros((1, D_MODEL), jnp.float32)
    return (wq, wk, wv, wo, ln1_g, ln1_b, w1, b1, w2, b2, ln2_g, ln2_b)


# ------------------------- pure-JAX reference --------------------------------
def encoder_layer_ref(x, params):
    (wq, wk, wv, wo, ln1_g, ln1_b, w1, b1, w2, b2, ln2_g, ln2_b) = params

    def ln(v, g, b):
        mu = jnp.mean(v, axis=-1, keepdims=True)
        var = jnp.mean((v - mu) ** 2, axis=-1, keepdims=True)
        return (v - mu) * jax.lax.rsqrt(var + LN_EPS) * g + b

    q = (x @ wq).reshape(B, S, N_HEAD, D_K).transpose(0, 2, 1, 3)
    k = (x @ wk).reshape(B, S, N_HEAD, D_K).transpose(0, 2, 1, 3)
    v = (x @ wv).reshape(B, S, N_HEAD, D_V).transpose(0, 2, 1, 3)
    scores = jnp.einsum("bhqd,bhkd->bhqk", q, k) / (D_K ** 0.5)
    attn = jax.nn.softmax(scores, axis=-1)
    o = jnp.einsum("bhqk,bhkd->bhqd", attn, v).transpose(0, 2, 1, 3).reshape(B, S, -1)
    y1 = ln(o @ wo + x, ln1_g, ln1_b)
    h = jnp.maximum(y1 @ w1 + b1, 0.0)
    y2 = ln(h @ w2 + b2 + y1, ln2_g, ln2_b)
    return y2, attn


# --------------------------------- main ---------------------------------------
if __name__ == "__main__":
    key = jax.random.PRNGKey(0)
    kx, kp = jax.random.split(key)
    x = jax.random.normal(kx, (B, S, D_MODEL), jnp.float32)
    params = make_params(kp)

    out, attn = encoder_layer(x, params)
    out = jax.block_until_ready(out)
    attn = jax.block_until_ready(attn)

    ref_out, ref_attn = encoder_layer_ref(x, params)
    assert out.shape == (B, S, D_MODEL) and attn.shape == (B, N_HEAD, S, S)
    # Tolerance accommodates the EUP approximate reciprocal in the softmax denominator.
    assert jnp.allclose(out, ref_out, rtol=1e-2, atol=1e-2)
    assert jnp.allclose(attn, ref_attn, rtol=1e-2, atol=1e-2)

    print("KERNEL_OK")
</pallas_src>

<mosaic_0001>
module attributes {stable_mosaic.version = 11 : i64} {
  func.func @encoder_layer_kernel(%arg0: memref<16x32xf32, #tpu.memory_space<vmem>>, %arg1: memref<32x96xf32, #tpu.memory_space<vmem>>, %arg2: memref<32x32xf32, #tpu.memory_space<vmem>>, %arg3: memref<32x64xf32, #tpu.memory_space<vmem>>, %arg4: memref<64x32xf32, #tpu.memory_space<vmem>>, %arg5: memref<4x32xf32, #tpu.memory_space<vmem>>, %arg6: memref<2x64xf32, #tpu.memory_space<vmem>>, %arg7: memref<16x32xf32, #tpu.memory_space<vmem>>, %arg8: memref<2x8x32xf32, #tpu.memory_space<vmem>>) attributes {dimension_semantics = [], scalar_prefetch = 0 : i64, scratch_operands = 0 : i64, tpu.core_type = #tpu.core_type<tc>} {
    %c0 = arith.constant 0 : index
    %c0_0 = arith.constant 0 : index
    %0 = vector.load %arg0[%c0, %c0_0] : memref<16x32xf32, #tpu.memory_space<vmem>>, vector<16x32xf32>
    %c0_1 = arith.constant 0 : index
    %c0_2 = arith.constant 0 : index
    %1 = vector.load %arg1[%c0_1, %c0_2] : memref<32x96xf32, #tpu.memory_space<vmem>>, vector<32x96xf32>
    %cst = arith.constant dense<0.000000e+00> : vector<16x96xf32>
    %2 = tpu.matmul %0, %1, %cst {dimension_numbers = #tpu.dot_dimension_numbers<[1], [0], [0], [1], [0, 0, 1, 1], [], []>} : vector<16x32xf32>, vector<32x96xf32>, vector<16x96xf32> -> vector<16x96xf32>
    %c0_3 = arith.constant 0 : index
    %c0_4 = arith.constant 0 : index
    %3 = vector.load %arg2[%c0_3, %c0_4] : memref<32x32xf32, #tpu.memory_space<vmem>>, vector<32x32xf32>
    %cst_5 = arith.constant 0.000000e+00 : f32
    %4 = vector.broadcast %cst_5 : f32 to vector<8x32xf32>
    %5 = vector.extract_strided_slice %2 {offsets = [0, 0], sizes = [8, 8], strides = [1, 1]} : vector<16x96xf32> to vector<8x8xf32>
    %6 = vector.extract_strided_slice %2 {offsets = [0, 32], sizes = [8, 8], strides = [1, 1]} : vector<16x96xf32> to vector<8x8xf32>
    %7 = vector.extract_strided_slice %2 {offsets = [0, 64], sizes = [8, 8], strides = [1, 1]} : vector<16x96xf32> to vector<8x8xf32>
    %8 = tpu.transpose %6, [1, 0] : vector<8x8xf32> -> vector<8x8xf32>
    %cst_6 = arith.constant dense<0.000000e+00> : vector<8x8xf32>
    %9 = tpu.matmul %5, %8, %cst_6 {dimension_numbers = #tpu.dot_dimension_numbers<[1], [0], [0], [1], [0, 0, 1, 1], [], []>} : vector<8x8xf32>, vector<8x8xf32>, vector<8x8xf32> -> vector<8x8xf32>
    %cst_7 = arith.constant dense<0xFF800000> : vector<8xf32>
    %10 = vector.multi_reduction <maximumf>, %9, %cst_7 [1] : vector<8x8xf32> to vector<8xf32>
    %11 = vector.shape_cast %10 : vector<8xf32> to vector<8x1xf32>
    %12 = vector.broadcast %11 : vector<8x1xf32> to vector<8x8xf32>
    %13 = arith.subf %9, %12 : vector<8x8xf32>
    %14 = math.exp %13 : vector<8x8xf32>
    %cst_8 = arith.constant dense<0.000000e+00> : vector<8xf32>
    %15 = vector.multi_reduction <add>, %14, %cst_8 [1] : vector<8x8xf32> to vector<8xf32>
    %16 = vector.shape_cast %15 : vector<8xf32> to vector<8x1xf32>
    %17 = tpu.reciprocal %16 {approx = true} : vector<8x1xf32> -> vector<8x1xf32>
    %18 = vector.broadcast %17 : vector<8x1xf32> to vector<8x8xf32>
    %19 = arith.mulf %14, %18 : vector<8x8xf32>
    %cst_9 = arith.constant dense<0.000000e+00> : vector<8x8xf32>
    %20 = tpu.matmul %19, %7, %cst_9 {dimension_numbers = #tpu.dot_dimension_numbers<[1], [0], [0], [1], [0, 0, 1, 1], [], []>} : vector<8x8xf32>, vector<8x8xf32>, vector<8x8xf32> -> vector<8x8xf32>
    %21 = vector.extract_strided_slice %3 {offsets = [0, 0], sizes = [8, 32], strides = [1, 1]} : vector<32x32xf32> to vector<8x32xf32>
    %cst_10 = arith.constant dense<0.000000e+00> : vector<8x32xf32>
    %22 = tpu.matmul %20, %21, %cst_10 {dimension_numbers = #tpu.dot_dimension_numbers<[1], [0], [0], [1], [0, 0, 1, 1], [], []>} : vector<8x8xf32>, vector<8x32xf32>, vector<8x32xf32> -> vector<8x32xf32>
    %23 = arith.addf %4, %22 : vector<8x32xf32>
    %24 = vector.extract_strided_slice %2 {offsets = [0, 8], sizes = [8, 8], strides = [1, 1]} : vector<16x96xf32> to vector<8x8xf32>
    %25 = vector.extract_strided_slice %2 {offsets = [0, 40], sizes = [8, 8], strides = [1, 1]} : vector<16x96xf32> to vector<8x8xf32>
    %26 = vector.extract_strided_slice %2 {offsets = [0, 72], sizes = [8, 8], strides = [1, 1]} : vector<16x96xf32> to vector<8x8xf32>
    %27 = tpu.transpose %25, [1, 0] : vector<8x8xf32> -> vector<8x8xf32>
    %cst_11 = arith.constant dense<0.000000e+00> : vector<8x8xf32>
    %28 = tpu.matmul %24, %27, %cst_11 {dimension_numbers = #tpu.dot_dimension_numbers<[1], [0], [0], [1], [0, 0, 1, 1], [], []>} : vector<8x8xf32>, vector<8x8xf32>, vector<8x8xf32> -> vector<8x8xf32>
    %cst_12 = arith.constant dense<0xFF800000> : vector<8xf32>
    %29 = vector.multi_reduction <maximumf>, %28, %cst_12 [1] : vector<8x8xf32> to vector<8xf32>
    %30 = vector.shape_cast %29 : vector<8xf32> to vector<8x1xf32>
    %31 = vector.broadcast %30 : vector<8x1xf32> to vector<8x8xf32>
    %32 = arith.subf %28, %31 : vector<8x8xf32>
    %33 = math.exp %32 : vector<8x8xf32>
    %cst_13 = arith.constant dense<0.000000e+00> : vector<8xf32>
    %34 = vector.multi_reduction <add>, %33, %cst_13 [1] : vector<8x8xf32> to vector<8xf32>
    %35 = vector.shape_cast %34 : vector<8xf32> to vector<8x1xf32>
    %36 = tpu.reciprocal %35 {approx = true} : vector<8x1xf32> -> vector<8x1xf32>
    %37 = vector.broadcast %36 : vector<8x1xf32> to vector<8x8xf32>
    %38 = arith.mulf %33, %37 : vector<8x8xf32>
    %cst_14 = arith.constant dense<0.000000e+00> : vector<8x8xf32>
    %39 = tpu.matmul %38, %26, %cst_14 {dimension_numbers = #tpu.dot_dimension_numbers<[1], [0], [0], [1], [0, 0, 1, 1], [], []>} : vector<8x8xf32>, vector<8x8xf32>, vector<8x8xf32> -> vector<8x8xf32>
    %40 = vector.extract_strided_slice %3 {offsets = [8, 0], sizes = [8, 32], strides = [1, 1]} : vector<32x32xf32> to vector<8x32xf32>
    %cst_15 = arith.constant dense<0.000000e+00> : vector<8x32xf32>
    %41 = tpu.matmul %39, %40, %cst_15 {dimension_numbers = #tpu.dot_dimension_numbers<[1], [0], [0], [1], [0, 0, 1, 1], [], []>} : vector<8x8xf32>, vector<8x32xf32>, vector<8x32xf32> -> vector<8x32xf32>
    %42 = arith.addf %23, %41 : vector<8x32xf32>
    %43 = vector.extract_strided_slice %2 {offsets = [0, 16], sizes = [8, 8], strides = [1, 1]} : vector<16x96xf32> to vector<8x8xf32>
    %44 = vector.extract_strided_slice %2 {offsets = [0, 48], sizes = [8, 8], strides = [1, 1]} : vector<16x96xf32> to vector<8x8xf32>
    %45 = vector.extract_strided_slice %2 {offsets = [0, 80], sizes = [8, 8], strides = [1, 1]} : vector<16x96xf32> to vector<8x8xf32>
    %46 = tpu.transpose %44, [1, 0] : vector<8x8xf32> -> vector<8x8xf32>
    %cst_16 = arith.constant dense<0.000000e+00> : vector<8x8xf32>
    %47 = tpu.matmul %43, %46, %cst_16 {dimension_numbers = #tpu.dot_dimension_numbers<[1], [0], [0], [1], [0, 0, 1, 1], [], []>} : vector<8x8xf32>, vector<8x8xf32>, vector<8x8xf32> -> vector<8x8xf32>
    %cst_17 = arith.constant dense<0xFF800000> : vector<8xf32>
    %48 = vector.multi_reduction <maximumf>, %47, %cst_17 [1] : vector<8x8xf32> to vector<8xf32>
    %49 = vector.shape_cast %48 : vector<8xf32> to vector<8x1xf32>
    %50 = vector.broadcast %49 : vector<8x1xf32> to vector<8x8xf32>
    %51 = arith.subf %47, %50 : vector<8x8xf32>
    %52 = math.exp %51 : vector<8x8xf32>
    %cst_18 = arith.constant dense<0.000000e+00> : vector<8xf32>
    %53 = vector.multi_reduction <add>, %52, %cst_18 [1] : vector<8x8xf32> to vector<8xf32>
    %54 = vector.shape_cast %53 : vector<8xf32> to vector<8x1xf32>
    %55 = tpu.reciprocal %54 {approx = true} : vector<8x1xf32> -> vector<8x1xf32>
    %56 = vector.broadcast %55 : vector<8x1xf32> to vector<8x8xf32>
    %57 = arith.mulf %52, %56 : vector<8x8xf32>
    %cst_19 = arith.constant dense<0.000000e+00> : vector<8x8xf32>
    %58 = tpu.matmul %57, %45, %cst_19 {dimension_numbers = #tpu.dot_dimension_numbers<[1], [0], [0], [1], [0, 0, 1, 1], [], []>} : vector<8x8xf32>, vector<8x8xf32>, vector<8x8xf32> -> vector<8x8xf32>
    %59 = vector.extract_strided_slice %3 {offsets = [16, 0], sizes = [8, 32], strides = [1, 1]} : vector<32x32xf32> to vector<8x32xf32>
    %cst_20 = arith.constant dense<0.000000e+00> : vector<8x32xf32>
    %60 = tpu.matmul %58, %59, %cst_20 {dimension_numbers = #tpu.dot_dimension_numbers<[1], [0], [0], [1], [0, 0, 1, 1], [], []>} : vector<8x8xf32>, vector<8x32xf32>, vector<8x32xf32> -> vector<8x32xf32>
    %61 = arith.addf %42, %60 : vector<8x32xf32>
    %62 = vector.extract_strided_slice %2 {offsets = [0, 24], sizes = [8, 8], strides = [1, 1]} : vector<16x96xf32> to vector<8x8xf32>
    %63 = vector.extract_strided_slice %2 {offsets = [0, 56], sizes = [8, 8], strides = [1, 1]} : vector<16x96xf32> to vector<8x8xf32>
    %64 = vector.extract_strided_slice %2 {offsets = [0, 88], sizes = [8, 8], strides = [1, 1]} : vector<16x96xf32> to vector<8x8xf32>
    %65 = tpu.transpose %63, [1, 0] : vector<8x8xf32> -> vector<8x8xf32>
    %cst_21 = arith.constant dense<0.000000e+00> : vector<8x8xf32>
    %66 = tpu.matmul %62, %65, %cst_21 {dimension_numbers = #tpu.dot_dimension_numbers<[1], [0], [0], [1], [0, 0, 1, 1], [], []>} : vector<8x8xf32>, vector<8x8xf32>, vector<8x8xf32> -> vector<8x8xf32>
    %cst_22 = arith.constant dense<0xFF800000> : vector<8xf32>
    %67 = vector.multi_reduction <maximumf>, %66, %cst_22 [1] : vector<8x8xf32> to vector<8xf32>
    %68 = vector.shape_cast %67 : vector<8xf32> to vector<8x1xf32>
    %69 = vector.broadcast %68 : vector<8x1xf32> to vector<8x8xf32>
    %70 = arith.subf %66, %69 : vector<8x8xf32>
    %71 = math.exp %70 : vector<8x8xf32>
    %cst_23 = arith.constant dense<0.000000e+00> : vector<8xf32>
    %72 = vector.multi_reduction <add>, %71, %cst_23 [1] : vector<8x8xf32> to vector<8xf32>
    %73 = vector.shape_cast %72 : vector<8xf32> to vector<8x1xf32>
    %74 = tpu.reciprocal %73 {approx = true} : vector<8x1xf32> -> vector<8x1xf32>
    %75 = vector.broadcast %74 : vector<8x1xf32> to vector<8x8xf32>
    %76 = arith.mulf %71, %75 : vector<8x8xf32>
    %cst_24 = arith.constant dense<0.000000e+00> : vector<8x8xf32>
    %77 = tpu.matmul %76, %64, %cst_24 {dimension_numbers = #tpu.dot_dimension_numbers<[1], [0], [0], [1], [0, 0, 1, 1], [], []>} : vector<8x8xf32>, vector<8x8xf32>, vector<8x8xf32> -> vector<8x8xf32>
    %78 = vector.extract_strided_slice %3 {offsets = [24, 0], sizes = [8, 32], strides = [1, 1]} : vector<32x32xf32> to vector<8x32xf32>
    %cst_25 = arith.constant dense<0.000000e+00> : vector<8x32xf32>
    %79 = tpu.matmul %77, %78, %cst_25 {dimension_numbers = #tpu.dot_dimension_numbers<[1], [0], [0], [1], [0, 0, 1, 1], [], []>} : vector<8x8xf32>, vector<8x32xf32>, vector<8x32xf32> -> vector<8x32xf32>
    %80 = arith.addf %61, %79 : vector<8x32xf32>
    %81 = tpu.concatenate %19, %38, %57, %76 in 1 : vector<8x8xf32>, vector<8x8xf32>, vector<8x8xf32>, vector<8x8xf32> -> vector<8x32xf32>
    %c0_26 = arith.constant 0 : index
    %c0_27 = arith.constant 0 : index
    %c0_28 = arith.constant 0 : index
    %82 = vector.load %arg8[%c0_26, %c0_27, %c0_28] : memref<2x8x32xf32, #tpu.memory_space<vmem>>, vector<1x8x32xf32>
    %83 = vector.shape_cast %82 : vector<1x8x32xf32> to vector<8x32xf32>
    %84 = vector.shape_cast %81 : vector<8x32xf32> to vector<1x8x32xf32>
    tpu.vector_store %arg8[%c0_26, %c0_27, %c0_28], %84 {strides = array<i32>} : memref<2x8x32xf32, #tpu.memory_space<vmem>>, vector<1x8x32xf32>,
    %cst_29 = arith.constant 0.000000e+00 : f32
    %85 = vector.broadcast %cst_29 : f32 to vector<8x32xf32>
    %86 = vector.extract_strided_slice %2 {offsets = [8, 0], sizes = [8, 8], strides = [1, 1]} : vector<16x96xf32> to vector<8x8xf32>
    %87 = vector.extract_strided_slice %2 {offsets = [8, 32], sizes = [8, 8], strides = [1, 1]} : vector<16x96xf32> to vector<8x8xf32>
    %88 = vector.extract_strided_slice %2 {offsets = [8, 64], sizes = [8, 8], strides = [1, 1]} : vector<16x96xf32> to vector<8x8xf32>
    %89 = tpu.transpose %87, [1, 0] : vector<8x8xf32> -> vector<8x8xf32>
    %cst_30 = arith.constant dense<0.000000e+00> : vector<8x8xf32>
    %90 = tpu.matmul %86, %89, %cst_30 {dimension_numbers = #tpu.dot_dimension_numbers<[1], [0], [0], [1], [0, 0, 1, 1], [], []>} : vector<8x8xf32>, vector<8x8xf32>, vector<8x8xf32> -> vector<8x8xf32>
    %cst_31 = arith.constant dense<0xFF800000> : vector<8xf32>
    %91 = vector.multi_reduction <maximumf>, %90, %cst_31 [1] : vector<8x8xf32> to vector<8xf32>
    %92 = vector.shape_cast %91 : vector<8xf32> to vector<8x1xf32>
    %93 = vector.broadcast %92 : vector<8x1xf32> to vector<8x8xf32>
    %94 = arith.subf %90, %93 : vector<8x8xf32>
    %95 = math.exp %94 : vector<8x8xf32>
    %cst_32 = arith.constant dense<0.000000e+00> : vector<8xf32>
    %96 = vector.multi_reduction <add>, %95, %cst_32 [1] : vector<8x8xf32> to vector<8xf32>
    %97 = vector.shape_cast %96 : vector<8xf32> to vector<8x1xf32>
    %98 = tpu.reciprocal %97 {approx = true} : vector<8x1xf32> -> vector<8x1xf32>
    %99 = vector.broadcast %98 : vector<8x1xf32> to vector<8x8xf32>
    %100 = arith.mulf %95, %99 : vector<8x8xf32>
    %cst_33 = arith.constant dense<0.000000e+00> : vector<8x8xf32>
    %101 = tpu.matmul %100, %88, %cst_33 {dimension_numbers = #tpu.dot_dimension_numbers<[1], [0], [0], [1], [0, 0, 1, 1], [], []>} : vector<8x8xf32>, vector<8x8xf32>, vector<8x8xf32> -> vector<8x8xf32>
    %102 = vector.extract_strided_slice %3 {offsets = [0, 0], sizes = [8, 32], strides = [1, 1]} : vector<32x32xf32> to vector<8x32xf32>
    %cst_34 = arith.constant dense<0.000000e+00> : vector<8x32xf32>
    %103 = tpu.matmul %101, %102, %cst_34 {dimension_numbers = #tpu.dot_dimension_numbers<[1], [0], [0], [1], [0, 0, 1, 1], [], []>} : vector<8x8xf32>, vector<8x32xf32>, vector<8x32xf32> -> vector<8x32xf32>
    %104 = arith.addf %85, %103 : vector<8x32xf32>
    %105 = vector.extract_strided_slice %2 {offsets = [8, 8], sizes = [8, 8], strides = [1, 1]} : vector<16x96xf32> to vector<8x8xf32>
    %106 = vector.extract_strided_slice %2 {offsets = [8, 40], sizes = [8, 8], strides = [1, 1]} : vector<16x96xf32> to vector<8x8xf32>
    %107 = vector.extract_strided_slice %2 {offsets = [8, 72], sizes = [8, 8], strides = [1, 1]} : vector<16x96xf32> to vector<8x8xf32>
    %108 = tpu.transpose %106, [1, 0] : vector<8x8xf32> -> vector<8x8xf32>
    %cst_35 = arith.constant dense<0.000000e+00> : vector<8x8xf32>
    %109 = tpu.matmul %105, %108, %cst_35 {dimension_numbers = #tpu.dot_dimension_numbers<[1], [0], [0], [1], [0, 0, 1, 1], [], []>} : vector<8x8xf32>, vector<8x8xf32>, vector<8x8xf32> -> vector<8x8xf32>
    %cst_36 = arith.constant dense<0xFF800000> : vector<8xf32>
    %110 = vector.multi_reduction <maximumf>, %109, %cst_36 [1] : vector<8x8xf32> to vector<8xf32>
    %111 = vector.shape_cast %110 : vector<8xf32> to vector<8x1xf32>
    %112 = vector.broadcast %111 : vector<8x1xf32> to vector<8x8xf32>
    %113 = arith.subf %109, %112 : vector<8x8xf32>
    %114 = math.exp %113 : vector<8x8xf32>
    %cst_37 = arith.constant dense<0.000000e+00> : vector<8xf32>
    %115 = vector.multi_reduction <add>, %114, %cst_37 [1] : vector<8x8xf32> to vector<8xf32>
    %116 = vector.shape_cast %115 : vector<8xf32> to vector<8x1xf32>
    %117 = tpu.reciprocal %116 {approx = true} : vector<8x1xf32> -> vector<8x1xf32>
    %118 = vector.broadcast %117 : vector<8x1xf32> to vector<8x8xf32>
    %119 = arith.mulf %114, %118 : vector<8x8xf32>
    %cst_38 = arith.constant dense<0.000000e+00> : vector<8x8xf32>
    %120 = tpu.matmul %119, %107, %cst_38 {dimension_numbers = #tpu.dot_dimension_numbers<[1], [0], [0], [1], [0, 0, 1, 1], [], []>} : vector<8x8xf32>, vector<8x8xf32>, vector<8x8xf32> -> vector<8x8xf32>
    %121 = vector.extract_strided_slice %3 {offsets = [8, 0], sizes = [8, 32], strides = [1, 1]} : vector<32x32xf32> to vector<8x32xf32>
    %cst_39 = arith.constant dense<0.000000e+00> : vector<8x32xf32>
    %122 = tpu.matmul %120, %121, %cst_39 {dimension_numbers = #tpu.dot_dimension_numbers<[1], [0], [0], [1], [0, 0, 1, 1], [], []>} : vector<8x8xf32>, vector<8x32xf32>, vector<8x32xf32> -> vector<8x32xf32>
    %123 = arith.addf %104, %122 : vector<8x32xf32>
    %124 = vector.extract_strided_slice %2 {offsets = [8, 16], sizes = [8, 8], strides = [1, 1]} : vector<16x96xf32> to vector<8x8xf32>
    %125 = vector.extract_strided_slice %2 {offsets = [8, 48], sizes = [8, 8], strides = [1, 1]} : vector<16x96xf32> to vector<8x8xf32>
    %126 = vector.extract_strided_slice %2 {offsets = [8, 80], sizes = [8, 8], strides = [1, 1]} : vector<16x96xf32> to vector<8x8xf32>
    %127 = tpu.transpose %125, [1, 0] : vector<8x8xf32> -> vector<8x8xf32>
    %cst_40 = arith.constant dense<0.000000e+00> : vector<8x8xf32>
    %128 = tpu.matmul %124, %127, %cst_40 {dimension_numbers = #tpu.dot_dimension_numbers<[1], [0], [0], [1], [0, 0, 1, 1], [], []>} : vector<8x8xf32>, vector<8x8xf32>, vector<8x8xf32> -> vector<8x8xf32>
    %cst_41 = arith.constant dense<0xFF800000> : vector<8xf32>
    %129 = vector.multi_reduction <maximumf>, %128, %cst_41 [1] : vector<8x8xf32> to vector<8xf32>
    %130 = vector.shape_cast %129 : vector<8xf32> to vector<8x1xf32>
    %131 = vector.broadcast %130 : vector<8x1xf32> to vector<8x8xf32>
    %132 = arith.subf %128, %131 : vector<8x8xf32>
    %133 = math.exp %132 : vector<8x8xf32>
    %cst_42 = arith.constant dense<0.000000e+00> : vector<8xf32>
    %134 = vector.multi_reduction <add>, %133, %cst_42 [1] : vector<8x8xf32> to vector<8xf32>
    %135 = vector.shape_cast %134 : vector<8xf32> to vector<8x1xf32>
    %136 = tpu.reciprocal %135 {approx = true} : vector<8x1xf32> -> vector<8x1xf32>
    %137 = vector.broadcast %136 : vector<8x1xf32> to vector<8x8xf32>
    %138 = arith.mulf %133, %137 : vector<8x8xf32>
    %cst_43 = arith.constant dense<0.000000e+00> : vector<8x8xf32>
    %139 = tpu.matmul %138, %126, %cst_43 {dimension_numbers = #tpu.dot_dimension_numbers<[1], [0], [0], [1], [0, 0, 1, 1], [], []>} : vector<8x8xf32>, vector<8x8xf32>, vector<8x8xf32> -> vector<8x8xf32>
    %140 = vector.extract_strided_slice %3 {offsets = [16, 0], sizes = [8, 32], strides = [1, 1]} : vector<32x32xf32> to vector<8x32xf32>
    %cst_44 = arith.constant dense<0.000000e+00> : vector<8x32xf32>
    %141 = tpu.matmul %139, %140, %cst_44 {dimension_numbers = #tpu.dot_dimension_numbers<[1], [0], [0], [1], [0, 0, 1, 1], [], []>} : vector<8x8xf32>, vector<8x32xf32>, vector<8x32xf32> -> vector<8x32xf32>
    %142 = arith.addf %123, %141 : vector<8x32xf32>
    %143 = vector.extract_strided_slice %2 {offsets = [8, 24], sizes = [8, 8], strides = [1, 1]} : vector<16x96xf32> to vector<8x8xf32>
    %144 = vector.extract_strided_slice %2 {offsets = [8, 56], sizes = [8, 8], strides = [1, 1]} : vector<16x96xf32> to vector<8x8xf32>
    %145 = vector.extract_strided_slice %2 {offsets = [8, 88], sizes = [8, 8], strides = [1, 1]} : vector<16x96xf32> to vector<8x8xf32>
    %146 = tpu.transpose %144, [1, 0] : vector<8x8xf32> -> vector<8x8xf32>
    %cst_45 = arith.constant dense<0.000000e+00> : vector<8x8xf32>
    %147 = tpu.matmul %143, %146, %cst_45 {dimension_numbers = #tpu.dot_dimension_numbers<[1], [0], [0], [1], [0, 0, 1, 1], [], []>} : vector<8x8xf32>, vector<8x8xf32>, vector<8x8xf32> -> vector<8x8xf32>
    %cst_46 = arith.constant dense<0xFF800000> : vector<8xf32>
    %148 = vector.multi_reduction <maximumf>, %147, %cst_46 [1] : vector<8x8xf32> to vector<8xf32>
    %149 = vector.shape_cast %148 : vector<8xf32> to vector<8x1xf32>
    %150 = vector.broadcast %149 : vector<8x1xf32> to vector<8x8xf32>
    %151 = arith.subf %147, %150 : vector<8x8xf32>
    %152 = math.exp %151 : vector<8x8xf32>
    %cst_47 = arith.constant dense<0.000000e+00> : vector<8xf32>
    %153 = vector.multi_reduction <add>, %152, %cst_47 [1] : vector<8x8xf32> to vector<8xf32>
    %154 = vector.shape_cast %153 : vector<8xf32> to vector<8x1xf32>
    %155 = tpu.reciprocal %154 {approx = true} : vector<8x1xf32> -> vector<8x1xf32>
    %156 = vector.broadcast %155 : vector<8x1xf32> to vector<8x8xf32>
    %157 = arith.mulf %152, %156 : vector<8x8xf32>
    %cst_48 = arith.constant dense<0.000000e+00> : vector<8x8xf32>
    %158 = tpu.matmul %157, %145, %cst_48 {dimension_numbers = #tpu.dot_dimension_numbers<[1], [0], [0], [1], [0, 0, 1, 1], [], []>} : vector<8x8xf32>, vector<8x8xf32>, vector<8x8xf32> -> vector<8x8xf32>
    %159 = vector.extract_strided_slice %3 {offsets = [24, 0], sizes = [8, 32], strides = [1, 1]} : vector<32x32xf32> to vector<8x32xf32>
    %cst_49 = arith.constant dense<0.000000e+00> : vector<8x32xf32>
    %160 = tpu.matmul %158, %159, %cst_49 {dimension_numbers = #tpu.dot_dimension_numbers<[1], [0], [0], [1], [0, 0, 1, 1], [], []>} : vector<8x8xf32>, vector<8x32xf32>, vector<8x32xf32> -> vector<8x32xf32>
    %161 = arith.addf %142, %160 : vector<8x32xf32>
    %162 = tpu.concatenate %100, %119, %138, %157 in 1 : vector<8x8xf32>, vector<8x8xf32>, vector<8x8xf32>, vector<8x8xf32> -> vector<8x32xf32>
    %c1 = arith.constant 1 : index
    %c0_50 = arith.constant 0 : index
    %c0_51 = arith.constant 0 : index
    %163 = vector.load %arg8[%c1, %c0_50, %c0_51] : memref<2x8x32xf32, #tpu.memory_space<vmem>>, vector<1x8x32xf32>
    %164 = vector.shape_cast %163 : vector<1x8x32xf32> to vector<8x32xf32>
    %165 = vector.shape_cast %162 : vector<8x32xf32> to vector<1x8x32xf32>
    tpu.vector_store %arg8[%c1, %c0_50, %c0_51], %165 {strides = array<i32>} : memref<2x8x32xf32, #tpu.memory_space<vmem>>, vector<1x8x32xf32>,
    %166 = tpu.concatenate %80, %161 in 0 : vector<8x32xf32>, vector<8x32xf32> -> vector<16x32xf32>
    %c0_52 = arith.constant 0 : index
    %c0_53 = arith.constant 0 : index
    %167 = vector.load %arg5[%c0_52, %c0_53] : memref<4x32xf32, #tpu.memory_space<vmem>>, vector<1x32xf32>
    %c1_54 = arith.constant 1 : index
    %c0_55 = arith.constant 0 : index
    %168 = vector.load %arg5[%c1_54, %c0_55] : memref<4x32xf32, #tpu.memory_space<vmem>>, vector<1x32xf32>
    %c2 = arith.constant 2 : index
    %c0_56 = arith.constant 0 : index
    %169 = vector.load %arg5[%c2, %c0_56] : memref<4x32xf32, #tpu.memory_space<vmem>>, vector<1x32xf32>
    %c3 = arith.constant 3 : index
    %c0_57 = arith.constant 0 : index
    %170 = vector.load %arg5[%c3, %c0_57] : memref<4x32xf32, #tpu.memory_space<vmem>>, vector<1x32xf32>
    %c0_58 = arith.constant 0 : index
    %c0_59 = arith.constant 0 : index
    %171 = vector.load %arg6[%c0_58, %c0_59] : memref<2x64xf32, #tpu.memory_space<vmem>>, vector<1x64xf32>
    %c1_60 = arith.constant 1 : index
    %c0_61 = arith.constant 0 : index
    %172 = vector.load %arg6[%c1_60, %c0_61] : memref<2x64xf32, #tpu.memory_space<vmem>>, vector<1x32xf32>
    %173 = arith.addf %166, %0 : vector<16x32xf32>
    %cst_62 = arith.constant dense<0.000000e+00> : vector<16xf32>
    %174 = vector.multi_reduction <add>, %173, %cst_62 [1] : vector<16x32xf32> to vector<16xf32>
    %175 = vector.shape_cast %174 : vector<16xf32> to vector<16x1xf32>
    %cst_63 = arith.constant 3.200000e+01 : f32
    %176 = vector.broadcast %cst_63 : f32 to vector<16x1xf32>
    %177 = arith.divf %175, %176 : vector<16x1xf32>
    %178 = vector.broadcast %177 : vector<16x1xf32> to vector<16x32xf32>
    %179 = arith.subf %173, %178 : vector<16x32xf32>
    %180 = arith.mulf %179, %179 : vector<16x32xf32>
    %cst_64 = arith.constant dense<0.000000e+00> : vector<16xf32>
    %181 = vector.multi_reduction <add>, %180, %cst_64 [1] : vector<16x32xf32> to vector<16xf32>
    %182 = vector.shape_cast %181 : vector<16xf32> to vector<16x1xf32>
    %cst_65 = arith.constant 3.200000e+01 : f32
    %183 = vector.broadcast %cst_65 : f32 to vector<16x1xf32>
    %184 = arith.divf %182, %183 : vector<16x1xf32>
    %185 = vector.broadcast %177 : vector<16x1xf32> to vector<16x32xf32>
    %186 = arith.subf %173, %185 : vector<16x32xf32>
    %cst_66 = arith.constant 9.99999997E-7 : f32
    %187 = vector.broadcast %cst_66 : f32 to vector<16x1xf32>
    %188 = arith.addf %184, %187 : vector<16x1xf32>
    %189 = math.rsqrt %188 : vector<16x1xf32>
    %190 = vector.broadcast %189 : vector<16x1xf32> to vector<16x32xf32>
    %191 = arith.mulf %186, %190 : vector<16x32xf32>
    %192 = vector.broadcast %167 : vector<1x32xf32> to vector<16x32xf32>
    %193 = arith.mulf %191, %192 : vector<16x32xf32>
    %194 = vector.broadcast %168 : vector<1x32xf32> to vector<16x32xf32>
    %195 = arith.addf %193, %194 : vector<16x32xf32>
    %c0_67 = arith.constant 0 : index
    %c0_68 = arith.constant 0 : index
    %196 = vector.load %arg3[%c0_67, %c0_68] : memref<32x64xf32, #tpu.memory_space<vmem>>, vector<32x64xf32>
    %cst_69 = arith.constant dense<0.000000e+00> : vector<16x64xf32>
    %197 = tpu.matmul %195, %196, %cst_69 {dimension_numbers = #tpu.dot_dimension_numbers<[1], [0], [0], [1], [0, 0, 1, 1], [], []>} : vector<16x32xf32>, vector<32x64xf32>, vector<16x64xf32> -> vector<16x64xf32>
    %198 = vector.broadcast %171 : vector<1x64xf32> to vector<16x64xf32>
    %199 = arith.addf %197, %198 : vector<16x64xf32>
    %cst_70 = arith.constant 0.000000e+00 : f32
    %200 = vector.broadcast %cst_70 : f32 to vector<16x64xf32>
    %201 = arith.maximumf %199, %200 : vector<16x64xf32>
    %c0_71 = arith.constant 0 : index
    %c0_72 = arith.constant 0 : index
    %202 = vector.load %arg4[%c0_71, %c0_72] : memref<64x32xf32, #tpu.memory_space<vmem>>, vector<64x32xf32>
    %cst_73 = arith.constant dense<0.000000e+00> : vector<16x32xf32>
    %203 = tpu.matmul %201, %202, %cst_73 {dimension_numbers = #tpu.dot_dimension_numbers<[1], [0], [0], [1], [0, 0, 1, 1], [], []>} : vector<16x64xf32>, vector<64x32xf32>, vector<16x32xf32> -> vector<16x32xf32>
    %204 = vector.broadcast %172 : vector<1x32xf32> to vector<16x32xf32>
    %205 = arith.addf %203, %204 : vector<16x32xf32>
    %206 = arith.addf %205, %195 : vector<16x32xf32>
    %cst_74 = arith.constant dense<0.000000e+00> : vector<16xf32>
    %207 = vector.multi_reduction <add>, %206, %cst_74 [1] : vector<16x32xf32> to vector<16xf32>
    %208 = vector.shape_cast %207 : vector<16xf32> to vector<16x1xf32>
    %cst_75 = arith.constant 3.200000e+01 : f32
    %209 = vector.broadcast %cst_75 : f32 to vector<16x1xf32>
    %210 = arith.divf %208, %209 : vector<16x1xf32>
    %211 = vector.broadcast %210 : vector<16x1xf32> to vector<16x32xf32>
    %212 = arith.subf %206, %211 : vector<16x32xf32>
    %213 = arith.mulf %212, %212 : vector<16x32xf32>
    %cst_76 = arith.constant dense<0.000000e+00> : vector<16xf32>
    %214 = vector.multi_reduction <add>, %213, %cst_76 [1] : vector<16x32xf32> to vector<16xf32>
    %215 = vector.shape_cast %214 : vector<16xf32> to vector<16x1xf32>
    %cst_77 = arith.constant 3.200000e+01 : f32
    %216 = vector.broadcast %cst_77 : f32 to vector<16x1xf32>
    %217 = arith.divf %215, %216 : vector<16x1xf32>
    %218 = vector.broadcast %210 : vector<16x1xf32> to vector<16x32xf32>
    %219 = arith.subf %206, %218 : vector<16x32xf32>
    %cst_78 = arith.constant 9.99999997E-7 : f32
    %220 = vector.broadcast %cst_78 : f32 to vector<16x1xf32>
    %221 = arith.addf %217, %220 : vector<16x1xf32>
    %222 = math.rsqrt %221 : vector<16x1xf32>
    %223 = vector.broadcast %222 : vector<16x1xf32> to vector<16x32xf32>
    %224 = arith.mulf %219, %223 : vector<16x32xf32>
    %225 = vector.broadcast %169 : vector<1x32xf32> to vector<16x32xf32>
    %226 = arith.mulf %224, %225 : vector<16x32xf32>
    %227 = vector.broadcast %170 : vector<1x32xf32> to vector<16x32xf32>
    %228 = arith.addf %226, %227 : vector<16x32xf32>
    %c0_79 = arith.constant 0 : index
    %c0_80 = arith.constant 0 : index
    %229 = vector.load %arg7[%c0_79, %c0_80] : memref<16x32xf32, #tpu.memory_space<vmem>>, vector<16x32xf32>
    tpu.vector_store %arg7[%c0_79, %c0_80], %228 {strides = array<i32>} : memref<16x32xf32, #tpu.memory_space<vmem>>, vector<16x32xf32>,
    return
  }
}

</mosaic_0001>

<bundles_post_ra>
// kernel: encoder_layer.1
= control target key start
LH: loop header
LB: loop body
LE: loop exit
PB: predicated region body
PF: predicated region fallthrough
CT: control target
= control target key end

     0   :  { %vm35_vm0 = vcmask 261120   ;;  %s3158_s0 = inlined_call_operand.vmem [shape: f32[16,32], index: 0, kind: input, shape index: {}]   ;;  %s3159_s1 = inlined_call_operand.vmem [shape: f32[32,96], index: 1, kind: input, shape index: {}]   ;;  %s3160_s2 = inlined_call_operand.vmem [shape: f32[32,32], index: 2, kind: input, shape index: {}]   ;;  %s3161_s3 = inlined_call_operand.vmem [shape: f32[32,64], index: 3, kind: input, shape index: {}]   ;;  %s3162_s4 = inlined_call_operand.vmem [shape: f32[64,32], index: 4, kind: input, shape index: {}]   ;;  %s3163_s5 = inlined_call_operand.vmem [shape: f32[4,32], index: 5, kind: input, shape index: {}]   ;;  %s3164_s6 = inlined_call_operand.vmem [shape: f32[2,64], index: 6, kind: input, shape index: {}]   ;;  %s3165_s7 = inlined_call_operand.hbm [shape: f32[16,32], index: 7, kind: output, shape index: {0}]   ;;  %s3166_s8 = inlined_call_operand.vmem [shape: f32[2,8,32], index: 8, kind: output, shape index: {1}]  }
   0x1   :  { %v31_v0 = vld [vmem:[%s3159_s1] sm:$0xff]  ;;  %v32_v1 = vld [vmem:[%s3159_s1 + $0x8] sm:$0xff]  ;;  %v33_v2 = vld [vmem:[%s3159_s1 + $0x10] sm:$0xff] }
   0x2   :  { %v2627_v3 = vpack.c.bf16 %v32_v1, %v31_v0  ;;  %v34_v4 = vld [vmem:[%s3159_s1 + $0x18] sm:$0xff]  ;;  %v2819_v5 = vld [vmem:[%s3158_s0] sm:$0xff] }
   0x3   :  { %v2631_v6 = vpack.c.bf16 %v34_v4, %v33_v2  ;;  %2474 = vmatprep.mubr.msk.f32.mxu0 %vm35_vm0, %v2819_v5 }
   0x4   :  { %14 = vsyncpa [#allocation3], 0  ;;  %2628 = vmatprep.subr.bf16.mxu0 %v2627_v3  ;;  %v2826_v7 = vld [vmem:[%s3158_s0 + $0x8] sm:$0xff]  ;;  %v2741_v8 = vmov 0.0   ;;  %vm2742_vm1 = vmmov 0   ;;  %s2743_s0 = smov 120  }
   0x5   :  { %2630 = vmatpush3.bf16.msra.mxu0 %v2627_v3  ;;  %2482 = vmatprep.subr.mxu1 %v2741_v8  ;;  %s2744_s1 = smov 96   ;;  %s2745_s17 = smov 88   ;;  %vm124_vm2 = vcmask 64512   ;;  %v2872_v30 = vld [vmem:[%s3160_s2 + $0x8] sm:$0xff]  ;;  %v2893_v39 = vld [vmem:[%s3160_s2] sm:$0xff]  ;;  %v2933_v1 = vld [vmem:[%s3160_s2 + $0x10] sm:$0xff] }
   0x6   :  { %2632 = vmatprep.subr.bf16.mxu0 %v2631_v6  ;;  %2484 = vmatprep.mubr.msk.f32.mxu1 %vm2742_vm1, %v2741_v8  ;;  %s2746_s18 = smov 56   ;;  %s2747_s19 = smov 64   ;;  %vm2207_vm3 = vcmask 523264   ;;  %vm1087_vm4 = vcmask 195584   ;;  %vm1085_vm5 = vcmask 130048  }
   0x7   :  { %s2748_s20 = smov 80   ;;  %s2749_s21 = smov 112  }
   0x8   :  { %s2750_s26 = smov 72   ;;  %s2751_s27 = smov 104  }
   0x9   :  { %2634 = vmatpush3.bf16.msra.mxu0 %v2631_v6  ;;  %s2752_s28 = smov 48   ;;  %s2753_s9 = smov 40  }
   0xa   :  { %2477 = vmatprep.subr.mxu0 %v2741_v8 }
   0xc   :  { %2475 = vmatmul.mubr.msk.f32.vlgmr.msra.gmra.mrb[0].mxu0 %vm35_vm0, %v2826_v7 }
   0xd   :  { %2479 = vmatprep.mubr.msk.f32.mxu0 %vm2742_vm1, %v2741_v8 }
  0xdf   :  { %v2836_v9 = vpop.f32.mrb[0].mxu0 }
  0xe0   :  { %v2838_v10 = vpop.f32.mrb[1].mxu0 }
  0xe1   :  { %286 = vrot.lane.b32.xlu1 %v2838_v10, %s2743_s0  ;;  %122 = vrot.lane.b32.xlu0 %v2838_v10, %s2744_s1 }
  0xe5   :  { %288 = vrot.lane.b32.xlu0 %v2838_v10, %s2745_s17 }
 0x153   :  { %v123_v11 = vpop.permute.xlu0 %122  ;;  %v287_v13 = vpop.permute.xlu1 %286 }
 0x154   :  { %2478 = vmatpush3.xpose.msk.msra.mxu0 %vm124_vm2, %v123_v11 }
 0x155   :  { %2487 = vmatprep.subr.mxu0 %v2741_v8 }
 0x157   :  { %2480 = vmatmul.mubr.msk.f32.vlgmr.msra.gmra.mrb[2].mxu0 %vm124_vm2, %v2838_v10  ;;  %v289_v12 = vpop.permute.xlu0 %288 }
 0x158   :  { %2488 = vmatpush3.xpose.msk.msra.mxu0 %vm124_vm2, %v289_v12  ;;  %2489 = vmatprep.mubr.msk.f32.mxu0 %vm2742_vm1, %v2741_v8 }
 0x159   :  { %2497 = vmatprep.subr.mxu0 %v2741_v8 }
 0x15b   :  { %2490 = vmatmul.mubr.msk.f32.vlgmr.msra.gmra.mrb[4].mxu0 %vm124_vm2, %v287_v13 }
 0x15c   :  { %2499 = vmatprep.mubr.msk.f32.mxu0 %vm2742_vm1, %v2741_v8  ;;  %2498 = vmatpush3.msra.mxu0 %v2872_v30 }
 0x15d   :  { %2507 = vmatprep.subr.mxu0 %v2741_v8 }
 0x22a   :  { %v195_v14 = vpop.f32.mrb[2].mxu0 }
 0x22b   :  { %v2481_v15 = vpop.f32.mrb[3].mxu0  ;;  %v199_v16 = vsel %vm124_vm2, %v195_v14, -inf }
 0x22c   :  { %200 = vmax.xlane.f32.xlu1 %v199_v16 }
 0x22e   :  { %v360_v17 = vpop.f32.mrb[4].mxu0 }
 0x22f   :  { %v2491_v18 = vpop.f32.mrb[5].mxu0  ;;  %v364_v19 = vsel %vm124_vm2, %v360_v17, -inf }
 0x230   :  { %365 = vmax.xlane.f32.xlu0 %v364_v19 }
 0x2b9   :  { %v201_v20 = vpop.xlane.xlu1 %200 }
 0x2ba   :  { %v202_v21 = vsub.f32 %v195_v14, %v201_v20 }
 0x2bc   :  { %v203_v22 = vmul.f32 1.442695, %v202_v21 }
 0x2bd   :  { %v366_v23 = vpop.xlane.xlu0 %365 }
 0x2be   :  { %2677 = vpow2.f32 %v203_v22  ;;  %v367_v24 = vsub.f32 %v360_v17, %v366_v23 }
 0x2c0   :  { %v368_v25 = vmul.f32 1.442695, %v367_v24 }
 0x2c2   :  { %2679 = vpow2.f32 %v368_v25 }
 0x2c8   :  { %v2678_v26 = vpop.eup %2677 }
 0x2c9   :  { %v205_v27 = vsel %vm124_vm2, %v2678_v26, 0.0 }
 0x2ca   :  { %206 = vadd.xlane.f32.xlu0 %v205_v27 }
 0x2cc   :  { %v2680_v28 = vpop.eup %2679 }
 0x2cd   :  { %v370_v29 = vsel %vm124_vm2, %v2680_v28, 0.0 }
 0x2ce   :  { %371 = vadd.xlane.f32.xlu1 %v370_v29 }
 0x2df   :  { %375 = vrot.lane.b32.xlu1 %v2838_v10, %s2746_s18 }
 0x2e0   :  { %210 = vrot.lane.b32.xlu0 %v2838_v10, %s2747_s19 }
 0x2e3   :  { %599 = vrot.lane.b32.xlu1 %v2838_v10, %s2748_s20 }
 0x2e4   :  { %597 = vrot.lane.b32.xlu0 %v2838_v10, %s2749_s21 }
 0x357   :  { %v207_v31 = vpop.xlane.xlu0 %206 }
 0x358   :  { %2681 = vrcp.f32 %v207_v31 }
 0x35b   :  { %v372_v32 = vpop.xlane.xlu1 %371  ;;  %v211_v33 = vpop.permute.xlu0 %210 }
 0x35c   :  { %2683 = vrcp.f32 %v372_v32  ;;  %2483 = vmatpush3.msra.mxu1 %v211_v33 }
 0x35d   :  { %2492 = vmatprep.subr.mxu1 %v2741_v8 }
 0x35f   :  { %v376_v36 = vpop.permute.xlu1 %375  ;;  %v598_v45 = vpop.permute.xlu0 %597 }
 0x362   :  { %v2682_v34 = vpop.eup %2681 }
 0x363   :  { %v2877_v35 = vmul.f32 %v2682_v34, %v2678_v26  ;;  %v600_v43 = vpop.permute.xlu1 %599  ;;  %v2971_v26 = vld [vmem:[%s3160_s2 + $0x18] sm:$0xff] }
 0x365   :  { %2485 = vmatmul.mubr.msk.f32.vlgmr.msra.gmra.mrb[0].mxu1 %vm124_vm2, %v2877_v35 }
 0x366   :  { %v2684_v37 = vpop.eup %2683  ;;  %2493 = vmatpush3.msra.mxu1 %v376_v36  ;;  %2494 = vmatprep.mubr.msk.f32.mxu1 %vm2742_vm1, %v2741_v8 }
 0x367   :  { %v2883_v38 = vmul.f32 %v2684_v37, %v2680_v28  ;;  %2502 = vmatprep.subr.mxu1 %v2741_v8 }
 0x369   :  { %2495 = vmatmul.mubr.msk.f32.vlgmr.msra.gmra.mrb[2].mxu1 %vm124_vm2, %v2883_v38 }
 0x36a   :  { %2504 = vmatprep.mubr.msk.f32.mxu1 %vm2742_vm1, %v2741_v8  ;;  %2503 = vmatpush3.msra.mxu1 %v2893_v39 }
 0x36b   :  { %2512 = vmatprep.subr.mxu1 %v2741_v8 }
 0x438   :  { %v282_v40 = vpop.f32.mrb[0].mxu1 }
 0x439   :  { %v2486_v41 = vpop.f32.mrb[1].mxu1  ;;  %2505 = vmatmul.mubr.msk.f32.vlgmr.msra.gmra.mrb[4].mxu1 %vm124_vm2, %v282_v40 }
 0x43a   :  { %2514 = vmatprep.mubr.msk.f32.mxu1 %vm2742_vm1, %v2741_v8 }
 0x43c   :  { %v447_v42 = vpop.f32.mrb[2].mxu1 }
 0x43d   :  { %v2496_v44 = vpop.f32.mrb[3].mxu1  ;;  %2500 = vmatmul.mubr.msk.f32.vlgmr.msra.gmra.mrb[6].mxu0 %vm124_vm2, %v447_v42 }
 0x43e   :  { %2508 = vmatpush3.xpose.msk.msra.mxu0 %vm124_vm2, %v600_v43  ;;  %2509 = vmatprep.mubr.msk.f32.mxu0 %vm2742_vm1, %v2741_v8 }
 0x43f   :  { %2517 = vmatprep.subr.mxu0 %v2741_v8 }
 0x441   :  { %2510 = vmatmul.mubr.msk.f32.vlgmr.msra.gmra.mrb[8].mxu0 %vm124_vm2, %v598_v45 }
 0x442   :  { %2519 = vmatprep.mubr.msk.f32.mxu0 %vm2742_vm1, %v2741_v8  ;;  %2518 = vmatpush3.msra.mxu0 %v2933_v1 }
 0x443   :  { %2527 = vmatprep.subr.mxu0 %v2741_v8 }
 0x50c   :  { %v593_v46 = vpop.f32.mrb[4].mxu1 }
 0x50d   :  { %v2506_v47 = vpop.f32.mrb[5].mxu1 }
 0x510   :  { %v520_v48 = vpop.f32.mrb[6].mxu0 }
 0x511   :  { %v594_v49 = vadd.f32 %v593_v46, %v520_v48  ;;  %v2501_v50 = vpop.f32.mrb[7].mxu0 }
 0x514   :  { %v671_v51 = vpop.f32.mrb[8].mxu0 }
 0x515   :  { %v2511_v52 = vpop.f32.mrb[9].mxu0  ;;  %v675_v53 = vsel %vm124_vm2, %v671_v51, -inf }
 0x516   :  { %676 = vmax.xlane.f32.xlu1 %v675_v53 }
 0x527   :  { %838 = vrot.lane.b32.xlu1 %v2838_v10, %s2750_s26 }
 0x52b   :  { %836 = vrot.lane.b32.xlu1 %v2838_v10, %s2751_s27 }
 0x52f   :  { %1091 = vrot.lane.b32.xlu1 %v2836_v9, %s2744_s1 }
 0x5a3   :  { %v677_v54 = vpop.xlane.xlu1 %676 }
 0x5a4   :  { %v678_v55 = vsub.f32 %v671_v51, %v677_v54 }
 0x5a6   :  { %v679_v56 = vmul.f32 1.442695, %v678_v55 }
 0x5a7   :  { %v839_v62 = vpop.permute.xlu1 %838 }
 0x5a8   :  { %2685 = vpow2.f32 %v679_v56 }
 0x5ab   :  { %v837_v0 = vpop.permute.xlu1 %836 }
 0x5af   :  { %v1092_v20 = vpop.permute.xlu1 %1091 }
 0x5b2   :  { %v2686_v57 = vpop.eup %2685 }
 0x5b3   :  { %v681_v58 = vsel %vm124_vm2, %v2686_v57, 0.0 }
 0x5b4   :  { %682 = vadd.xlane.f32.xlu0 %v681_v58 }
 0x5ca   :  { %686 = vrot.lane.b32.xlu0 %v2838_v10, %s2752_s28 }
 0x641   :  { %v683_v59 = vpop.xlane.xlu0 %682 }
 0x642   :  { %2687 = vrcp.f32 %v683_v59 }
 0x645   :  { %v687_v60 = vpop.permute.xlu0 %686 }
 0x646   :  { %2513 = vmatpush3.msra.mxu1 %v687_v60 }
 0x647   :  { %2522 = vmatprep.subr.mxu1 %v2741_v8 }
 0x64c   :  { %v2688_v61 = vpop.eup %2687 }
 0x64d   :  { %v2919_v63 = vmul.f32 %v2688_v61, %v2686_v57 }
 0x64f   :  { %2515 = vmatmul.mubr.msk.f32.vlgmr.msra.gmra.mrb[6].mxu1 %vm124_vm2, %v2919_v63 }
 0x650   :  { %2523 = vmatpush3.xpose.msk.msra.mxu1 %vm124_vm2, %v839_v62  ;;  %2524 = vmatprep.mubr.msk.f32.mxu1 %vm2742_vm1, %v2741_v8 }
 0x651   :  { %2532 = vmatprep.subr.mxu1 %v2741_v8 }
 0x653   :  { %2525 = vmatmul.mubr.msk.f32.vlgmr.msra.gmra.mrb[8].mxu1 %vm124_vm2, %v837_v0 }
 0x654   :  { %2534 = vmatprep.mubr.msk.f32.mxu1 %vm2742_vm1, %v2741_v8  ;;  %2533 = vmatpush3.msra.mxu1 %v2971_v26 }
 0x655   :  { %2542 = vmatprep.subr.mxu1 %v2741_v8 }
 0x722   :  { %v758_v2 = vpop.f32.mrb[6].mxu1 }
 0x723   :  { %v2516_v3 = vpop.f32.mrb[7].mxu1  ;;  %2520 = vmatmul.mubr.msk.f32.vlgmr.msra.gmra.mrb[10].mxu0 %vm124_vm2, %v758_v2 }
 0x724   :  { %2529 = vmatprep.mubr.msk.f32.mxu0 %vm2742_vm1, %v2741_v8 }
 0x726   :  { %v910_v4 = vpop.f32.mrb[8].mxu1 }
 0x727   :  { %v2526_v6 = vpop.f32.mrb[9].mxu1  ;;  %v914_v11 = vsel %vm124_vm2, %v910_v4, -inf }
 0x728   :  { %915 = vmax.xlane.f32.xlu0 %v914_v11 }
 0x73e   :  { %925 = vrot.lane.b32.xlu0 %v2838_v10, %s2753_s9 }
 0x742   :  { %1256 = vrot.lane.b32.xlu0 %v2836_v9, %s2745_s17 }
 0x7b5   :  { %v916_v12 = vpop.xlane.xlu0 %915 }
 0x7b6   :  { %v917_v13 = vsub.f32 %v910_v4, %v916_v12 }
 0x7b8   :  { %v918_v14 = vmul.f32 1.442695, %v917_v13 }
 0x7b9   :  { %v926_v15 = vpop.permute.xlu0 %925 }
 0x7ba   :  { %2689 = vpow2.f32 %v918_v14  ;;  %2528 = vmatpush3.msra.mxu0 %v926_v15 }
 0x7bb   :  { %2537 = vmatprep.subr.mxu0 %v2741_v8 }
 0x7bd   :  { %v1257_v24 = vpop.permute.xlu0 %1256 }
 0x7c4   :  { %v2690_v16 = vpop.eup %2689 }
 0x7c5   :  { %v920_v17 = vsel %vm124_vm2, %v2690_v16, 0.0 }
 0x7c6   :  { %921 = vadd.xlane.f32.xlu1 %v920_v17 }
 0x7d7   :  { %1254 = vrot.lane.b32.xlu1 %v2836_v9, %s2743_s0  ;;  %s2756_s0 = smov 24  }
 0x7f6   :  { %v831_v18 = vpop.f32.mrb[10].mxu0 }
 0x7f7   :  { %v835_v10 = vadd.f32 %v831_v18, %v594_v49  ;;  %v2521_v19 = vpop.f32.mrb[11].mxu0 }
 0x853   :  { %v922_v21 = vpop.xlane.xlu1 %921 }
 0x854   :  { %2691 = vrcp.f32 %v922_v21 }
 0x857   :  { %v1255_v25 = vpop.permute.xlu1 %1254 }
 0x85e   :  { %v2692_v22 = vpop.eup %2691 }
 0x85f   :  { %v2949_v23 = vmul.f32 %v2692_v22, %v2690_v16 }
 0x861   :  { %2530 = vmatmul.mubr.msk.f32.vlgmr.msra.gmra.mrb[12].mxu0 %vm124_vm2, %v2949_v23 }
 0x862   :  { %2538 = vmatpush3.xpose.msk.msra.mxu0 %vm124_vm2, %v1092_v20  ;;  %2539 = vmatprep.mubr.msk.f32.mxu0 %vm2742_vm1, %v2741_v8 }
 0x863   :  { %2547 = vmatprep.subr.mxu0 %v2741_v8 }
 0x865   :  { %2540 = vmatmul.mubr.msk.f32.vlgmr.msra.gmra.mrb[14].mxu0 %vm124_vm2, %v2836_v9 }
 0x866   :  { %2548 = vmatpush3.xpose.msk.msra.mxu0 %vm124_vm2, %v1257_v24  ;;  %2549 = vmatprep.mubr.msk.f32.mxu0 %vm2742_vm1, %v2741_v8 }
 0x867   :  { %2557 = vmatprep.subr.mxu0 %v2741_v8 }
 0x869   :  { %2550 = vmatmul.mubr.msk.f32.vlgmr.msra.gmra.mrb[16].mxu0 %vm124_vm2, %v1255_v25 }
 0x86a   :  { %2558 = vmatpush3.msra.mxu0 %v2872_v30  ;;  %2559 = vmatprep.mubr.msk.f32.mxu0 %vm2742_vm1, %v2741_v8 }
 0x86b   :  { %2567 = vmatprep.subr.mxu0 %v2741_v8 }
 0x934   :  { %v997_v27 = vpop.f32.mrb[12].mxu0 }
 0x935   :  { %v2531_v28 = vpop.f32.mrb[13].mxu0  ;;  %2535 = vmatmul.mubr.msk.f32.vlgmr.msra.gmra.mrb[10].mxu1 %vm124_vm2, %v997_v27 }
 0x936   :  { %2544 = vmatprep.mubr.msk.f32.mxu1 %vm2742_vm1, %v2741_v8 }
 0x938   :  { %v1163_v29 = vpop.f32.mrb[14].mxu0 }
 0x939   :  { %v2541_v30 = vpop.f32.mrb[15].mxu0  ;;  %v1167_v31 = vsel %vm124_vm2, %v1163_v29, -inf }
 0x93a   :  { %1168 = vmax.xlane.f32.xlu0 %v1167_v31 }
 0x93c   :  { %v1328_v32 = vpop.f32.mrb[16].mxu0 }
 0x93d   :  { %v2551_v33 = vpop.f32.mrb[17].mxu0  ;;  %v1332_v34 = vsel %vm124_vm2, %v1328_v32, -inf }
 0x93e   :  { %1333 = vmax.xlane.f32.xlu1 %v1332_v34 }
 0x94f   :  { %1178 = vrot.lane.b32.xlu1 %v2836_v9, %s2747_s19 }
 0x953   :  { %1567 = vrot.lane.b32.xlu1 %v2836_v9, %s2748_s20  ;;  %s2757_s20 = smov [#allocation2]  }
 0x957   :  { %1565 = vrot.lane.b32.xlu1 %v2836_v9, %s2749_s21  ;;  %s2336_s21 = sshll.u32 %s2757_s20, 4  ;;  %s2337_s21 = int_to_ptr.vmem [resolvable:$true] %s2336_s21 }
 0x958   :  { %s2717_s25 = scalar_lea.vmem %s2337_s21, 256  ;;  %p2722_p1 = scmp.lt.s32.totalorder %s2337_s21, %s2337_s21 }
 0x959   :  { %p2718_p0 = scmp.ne.s32.totalorder %s2337_s21, %s2717_s25  ;;  %p2723_p2 = scmp.lt.s32.totalorder %s2717_s25, %s2717_s25 }
 0x95b   :  { %p2724_p3 = por %p2723_p2, %p2722_p1 }
 0x95d   :  { %p2725_p4 = pnand %p2724_p3, %p2718_p0 }
 0x9c7   :  { %v1169_v36 = vpop.xlane.xlu0 %1168 }
 0x9c8   :  { %v1170_v37 = vsub.f32 %v1163_v29, %v1169_v36 }
 0x9ca   :  { %v1171_v40 = vmul.f32 1.442695, %v1170_v37 }
 0x9cb   :  { %v1334_v41 = vpop.xlane.xlu1 %1333 }
 0x9cc   :  { %2693 = vpow2.f32 %v1171_v40  ;;  %v1335_v42 = vsub.f32 %v1328_v32, %v1334_v41 }
 0x9ce   :  { %v1336_v43 = vmul.f32 1.442695, %v1335_v42 }
 0x9cf   :  { %v1179_v44 = vpop.permute.xlu1 %1178 }
 0x9d0   :  { %2695 = vpow2.f32 %v1336_v43  ;;  %2543 = vmatpush3.msra.mxu1 %v1179_v44 }
 0x9d1   :  { %2552 = vmatprep.subr.mxu1 %v2741_v8 }
 0x9d3   :  { %v1568_v61 = vpop.permute.xlu1 %1567 }
 0x9d6   :  { %v2694_v45 = vpop.eup %2693 }
 0x9d7   :  { %v1173_v46 = vsel %vm124_vm2, %v2694_v45, 0.0 }
 0x9d8   :  { %1174 = vadd.xlane.f32.xlu0 %v1173_v46 }
 0x9da   :  { %v2696_v47 = vpop.eup %2695 }
 0x9db   :  { %v1338_v48 = vsel %vm124_vm2, %v2696_v47, 0.0 }
 0x9dc   :  { %1339 = vadd.xlane.f32.xlu0 %v1338_v48 }
 0x9f2   :  { %1343 = vrot.lane.b32.xlu0 %v2836_v9, %s2746_s18 }
 0xa08   :  { %v1070_v49 = vpop.f32.mrb[10].mxu1 }
 0xa09   :  { %v2991_v50 = vadd.f32 %v1070_v49, %v835_v10  ;;  %v2536_v51 = vpop.f32.mrb[11].mxu1 }
 0xa0b   :  { %v2063_v31 = vadd.f32 %v2991_v50, %v2819_v5 }
 0xa65   :  { %v1175_v52 = vpop.xlane.xlu0 %1174 }
 0xa66   :  { %2697 = vrcp.f32 %v1175_v52 }
 0xa69   :  { %v1340_v53 = vpop.xlane.xlu0 %1339 }
 0xa6a   :  { %2699 = vrcp.f32 %v1340_v53 }
 0xa6d   :  { %v1344_v56 = vpop.permute.xlu0 %1343 }
 0xa70   :  { %v2698_v54 = vpop.eup %2697 }
 0xa71   :  { %v2993_v55 = vmul.f32 %v2698_v54, %v2694_v45 }
 0xa73   :  { %2545 = vmatmul.mubr.msk.f32.vlgmr.msra.gmra.mrb[12].mxu1 %vm124_vm2, %v2993_v55 }
 0xa74   :  { %v2700_v57 = vpop.eup %2699  ;;  %2553 = vmatpush3.msra.mxu1 %v1344_v56  ;;  %2554 = vmatprep.mubr.msk.f32.mxu1 %vm2742_vm1, %v2741_v8 }
 0xa75   :  { %v2999_v58 = vmul.f32 %v2700_v57, %v2696_v47  ;;  %2562 = vmatprep.subr.mxu1 %v2741_v8 }
 0xa77   :  { %2555 = vmatmul.mubr.msk.f32.vlgmr.msra.gmra.mrb[14].mxu1 %vm124_vm2, %v2999_v58 }
 0xa78   :  { %2563 = vmatpush3.msra.mxu1 %v2893_v39  ;;  %2564 = vmatprep.mubr.msk.f32.mxu1 %vm2742_vm1, %v2741_v8  ;;  %v1566_v39 = vpop.permute.xlu1 %1565 }
 0xa79   :  { %2572 = vmatprep.subr.mxu1 %v2741_v8 }
 0xb46   :  { %v1250_v59 = vpop.f32.mrb[12].mxu1 }
 0xb47   :  { %v2546_v60 = vpop.f32.mrb[13].mxu1  ;;  %2565 = vmatmul.mubr.msk.f32.vlgmr.msra.gmra.mrb[16].mxu1 %vm124_vm2, %v1250_v59 }
 0xb48   :  { %2574 = vmatprep.mubr.msk.f32.mxu1 %vm2742_vm1, %v2741_v8 }
 0xb4a   :  { %v1415_v62 = vpop.f32.mrb[14].mxu1 }
 0xb4b   :  { %v2556_v0 = vpop.f32.mrb[15].mxu1  ;;  %2560 = vmatmul.mubr.msk.f32.vlgmr.msra.gmra.mrb[18].mxu0 %vm124_vm2, %v1415_v62 }
 0xb4c   :  { %2568 = vmatpush3.xpose.msk.msra.mxu0 %vm124_vm2, %v1568_v61  ;;  %2569 = vmatprep.mubr.msk.f32.mxu0 %vm2742_vm1, %v2741_v8 }
 0xb4d   :  { %2577 = vmatprep.subr.mxu0 %v2741_v8 }
 0xb4f   :  { %2570 = vmatmul.mubr.msk.f32.vlgmr.msra.gmra.mrb[20].mxu0 %vm124_vm2, %v1566_v39 }
 0xb50   :  { %2578 = vmatpush3.msra.mxu0 %v2933_v1  ;;  %2579 = vmatprep.mubr.msk.f32.mxu0 %vm2742_vm1, %v2741_v8 }
 0xb51   :  { %2587 = vmatprep.subr.mxu0 %v2741_v8 }
 0xc1a   :  { %v1561_v2 = vpop.f32.mrb[16].mxu1 }
 0xc1b   :  { %v2566_v3 = vpop.f32.mrb[17].mxu1 }
 0xc1e   :  { %v1488_v4 = vpop.f32.mrb[18].mxu0 }
 0xc1f   :  { %v1562_v6 = vadd.f32 %v1561_v2, %v1488_v4  ;;  %v2561_v11 = vpop.f32.mrb[19].mxu0 }
 0xc22   :  { %v1639_v12 = vpop.f32.mrb[20].mxu0 }
 0xc23   :  { %v2571_v13 = vpop.f32.mrb[21].mxu0  ;;  %v1643_v14 = vsel %vm124_vm2, %v1639_v12, -inf }
 0xc24   :  { %1644 = vmax.xlane.f32.xlu0 %v1643_v14  ;;  %v2104_v13 = vld [vmem:[%s3161_s3] sm:$0xff]  ;;  %v2105_v14 = vld [vmem:[%s3161_s3 + $0x8] sm:$0xff] }
 0xc3a   :  { %1654 = vrot.lane.b32.xlu0 %v2836_v9, %s2752_s28 }
 0xc3e   :  { %1804 = vrot.lane.b32.xlu0 %v2836_v9, %s2751_s27 }
 0xcb1   :  { %v1645_v1 = vpop.xlane.xlu0 %1644 }
 0xcb2   :  { %v1646_v15 = vsub.f32 %v1639_v12, %v1645_v1  ;;  %v2635_v1 = vpack.c.bf16 %v2105_v14, %v2104_v13 }
 0xcb4   :  { %v1647_v16 = vmul.f32 1.442695, %v1646_v15  ;;  %v2106_v15 = vld [vmem:[%s3161_s3 + $0x10] sm:$0xff] }
 0xcb5   :  { %v1655_v17 = vpop.permute.xlu0 %1654 }
 0xcb6   :  { %2701 = vpow2.f32 %v1647_v16  ;;  %2573 = vmatpush3.msra.mxu1 %v1655_v17  ;;  %v2107_v16 = vld [vmem:[%s3161_s3 + $0x18] sm:$0xff] }
 0xcb7   :  { %2582 = vmatprep.subr.mxu1 %v2741_v8  ;;  %v2639_v17 = vpack.c.bf16 %v2107_v16, %v2106_v15 }
 0xcb9   :  { %v1805_v24 = vpop.permute.xlu0 %1804 }
 0xcc0   :  { %v2702_v18 = vpop.eup %2701 }
 0xcc1   :  { %v1649_v10 = vsel %vm124_vm2, %v2702_v18, 0.0 }
 0xcc2   :  { %1650 = vadd.xlane.f32.xlu1 %v1649_v10  ;;  %v2196_v10 = vld [vmem:[%s3162_s4 + $0x8] sm:$0xff] }
 0xcd3   :  { %1806 = vrot.lane.b32.xlu1 %v2836_v9, %s2750_s26 }
 0xd4f   :  { %v1651_v19 = vpop.xlane.xlu1 %1650 }
 0xd50   :  { %2703 = vrcp.f32 %v1651_v19  ;;  %v2197_v19 = vld [vmem:[%s3162_s4 + $0x10] sm:$0xff] }
 0xd53   :  { %v1807_v22 = vpop.permute.xlu1 %1806 }
 0xd5a   :  { %v2704_v20 = vpop.eup %2703 }
 0xd5b   :  { %v3030_v21 = vmul.f32 %v2704_v20, %v2702_v18  ;;  %v2195_v18 = vld [vmem:[%s3162_s4] sm:$0xff] }
 0xd5c   :  { %v2643_v20 = vpack.c.bf16 %v2196_v10, %v2195_v18 }
 0xd5d   :  { %2575 = vmatmul.mubr.msk.f32.vlgmr.msra.gmra.mrb[18].mxu1 %vm124_vm2, %v3030_v21 }
 0xd5e   :  { %2583 = vmatpush3.xpose.msk.msra.mxu1 %vm124_vm2, %v1807_v22  ;;  %2584 = vmatprep.mubr.msk.f32.mxu1 %vm2742_vm1, %v2741_v8  ;;  %v2198_v22 = vld [vmem:[%s3162_s4 + $0x18] sm:$0xff] }
 0xd5f   :  { %2592 = vmatprep.subr.mxu1 %v2741_v8 }
 0xd61   :  { %2585 = vmatmul.mubr.msk.f32.vlgmr.msra.gmra.mrb[20].mxu1 %vm124_vm2, %v1805_v24  ;;  %v2647_v24 = vpack.c.bf16 %v2198_v22, %v2197_v19 }
 0xd62   :  { %2593 = vmatpush3.msra.mxu1 %v2971_v26  ;;  %2594 = vmatprep.mubr.msk.f32.mxu1 %vm2742_vm1, %v2741_v8  ;;  %v2065_v26 = vsel %vm35_vm0, %v2063_v31, 0.0 }
 0xd63   :  { %2644 = vmatprep.subr.bf16.mxu1 %v2643_v20 }
 0xe30   :  { %v1726_v25 = vpop.f32.mrb[18].mxu1 }
 0xe31   :  { %v2576_v27 = vpop.f32.mrb[19].mxu1  ;;  %2580 = vmatmul.mubr.msk.f32.vlgmr.msra.gmra.mrb[22].mxu0 %vm124_vm2, %v1726_v25  ;;  %v2199_v25 = vld [vmem:[%s3162_s4 + $0x20] sm:$0xff] }
 0xe32   :  { %2589 = vmatprep.mubr.msk.f32.mxu0 %vm2742_vm1, %v2741_v8  ;;  %v2200_v27 = vld [vmem:[%s3162_s4 + $0x28] sm:$0xff] }
 0xe34   :  { %v1878_v28 = vpop.f32.mrb[20].mxu1 }
 0xe35   :  { %v2586_v29 = vpop.f32.mrb[21].mxu1  ;;  %v1882_v30 = vsel %vm124_vm2, %v1878_v28, -inf }
 0xe36   :  { %1883 = vmax.xlane.f32.xlu1 %v1882_v30 }
 0xe3a   :  { %2066 = vadd.xlane.f32.xlu1 %v2065_v26 }
 0xec3   :  { %v1884_v32 = vpop.xlane.xlu1 %1883 }
 0xec4   :  { %v1885_v33 = vsub.f32 %v1878_v28, %v1884_v32  ;;  %v2651_v28 = vpack.c.bf16 %v2200_v27, %v2199_v25 }
 0xec6   :  { %v1886_v34 = vmul.f32 1.442695, %v1885_v33 }
 0xec7   :  { %v2067_v47 = vpop.xlane.xlu1 %2066 }
 0xec8   :  { %2705 = vpow2.f32 %v1886_v34  ;;  %v2072_v48 = vmul.f32 0.03125, %v2067_v47  ;;  %v2391_v47 = vld [vmem:[%s3164_s6 + $0x1] ss:$0 sm:$0xff] }
 0xeca   :  { %v2074_v49 = vsub.f32 %v2063_v31, %v2072_v48 }
 0xecc   :  { %v2076_v54 = vmul.f32 %v2074_v49, %v2074_v49 }
 0xece   :  { %v2078_v56 = vsel %vm35_vm0, %v2076_v54, 0.0 }
 0xed2   :  { %v2706_v36 = vpop.eup %2705 }
 0xed3   :  { %v1888_v37 = vsel %vm124_vm2, %v2706_v36, 0.0 }
 0xed4   :  { %1889 = vadd.xlane.f32.xlu0 %v1888_v37  ;;  %v2202_v37 = vld [vmem:[%s3162_s4 + $0x38] sm:$0xff] }
 0xeea   :  { %1893 = vrot.lane.b32.xlu0 %v2836_v9, %s2753_s9 }
 0xf04   :  { %v1799_v8 = vpop.f32.mrb[22].mxu0 }
 0xf05   :  { %v1803_v40 = vadd.f32 %v1799_v8, %v1562_v6  ;;  %v2581_v41 = vpop.f32.mrb[23].mxu0  ;;  %v2387_v6 = vld [vmem:[%s3163_s5 + $0x1] ss:$0 sm:$0xff] }
 0xf61   :  { %v1890_v42 = vpop.xlane.xlu0 %1889 }
 0xf62   :  { %2707 = vrcp.f32 %v1890_v42 }
 0xf65   :  { %v1894_v5 = vpop.permute.xlu0 %1893 }
 0xf66   :  { %2588 = vmatpush3.msra.mxu0 %v1894_v5 }
 0xf67   :  { %2636 = vmatprep.subr.bf16.mxu0 %v2635_v1 }
 0xf6c   :  { %v2708_v43 = vpop.eup %2707 }
 0xf6d   :  { %v3052_v44 = vmul.f32 %v2708_v43, %v2706_v36  ;;  %v2201_v36 = vld [vmem:[%s3162_s4 + $0x30] sm:$0xff]  ;;  %s2754_s4 = smov 8  }
 0xf6e   :  { %v2655_v8 = vpack.c.bf16 %v2202_v37, %v2201_v36 }
 0xf6f   :  { %2590 = vmatmul.mubr.msk.f32.vlgmr.msra.gmra.mrb[24].mxu0 %vm124_vm2, %v3052_v44 }
 0xf70   :  { %2638 = vmatpush3.bf16.msra.mxu0 %v2635_v1 }
 0xf71   :  { %2640 = vmatprep.subr.bf16.mxu0 %v2639_v17 }
 0xf74   :  { %2642 = vmatpush3.bf16.msra.mxu0 %v2639_v17 }
0x1042   :  { %v1965_v45 = vpop.f32.mrb[24].mxu0 }
0x1043   :  { %v2591_v46 = vpop.f32.mrb[25].mxu0  ;;  %2595 = vmatmul.mubr.msk.f32.vlgmr.msra.gmra.mrb[22].mxu1 %vm124_vm2, %v1965_v45 }
0x1044   :  { %2646 = vmatpush3.bf16.msra.mxu1 %v2643_v20 }
0x1045   :  { %2648 = vmatprep.subr.bf16.mxu1 %v2647_v24 }
0x1048   :  { %2650 = vmatpush3.bf16.msra.mxu1 %v2647_v24 }
0x1049   :  { %2652 = vmatprep.subr.bf16.mxu1 %v2651_v28 }
0x104c   :  { %2654 = vmatpush3.bf16.msra.mxu1 %v2651_v28 }
0x104d   :  { %2656 = vmatprep.subr.bf16.mxu1 %v2655_v8 }
0x1050   :  { %2658 = vmatpush3.bf16.msra.mxu1 %v2655_v8 }
0x1116   :  { %v2038_v9 = vpop.f32.mrb[22].mxu1 }
0x1117   :  { %v2042_v50 = vadd.f32 %v2038_v9, %v1803_v40  ;;  %v2596_v51 = vpop.f32.mrb[23].mxu1  ;;  %v2388_v40 = vld [vmem:[%s3164_s6] ss:$0 sm:$0xff]  ;;  %s2755_s6 = smov 16  }
0x1119   :  { %v2064_v52 = vadd.f32 %v2042_v50, %v2826_v7  ;;  %v2386_v7 = vld [vmem:[%s3163_s5] ss:$0 sm:$0xff] }
0x111b   :  { %v2068_v53 = vsel %vm35_vm0, %v2064_v52, 0.0 }
0x111c   :  { %2069 = vadd.xlane.f32.xlu1 %v2068_v53 }
0x1120   :  { %2079 = vadd.xlane.f32.xlu1 %v2078_v56 }
0x11a9   :  { %v2070_v57 = vpop.xlane.xlu1 %2069 }
0x11aa   :  { %v2073_v59 = vmul.f32 0.03125, %v2070_v57 }
0x11ac   :  { %v2075_v60 = vsub.f32 %v2064_v52, %v2073_v59 }
0x11ad   :  { %v2080_v61 = vpop.xlane.xlu1 %2079 }
0x11ae   :  { %v2084_v62 = vmul.f32 0.03125, %v2080_v61  ;;  %v2077_v0 = vmul.f32 %v2075_v60, %v2075_v60 }
0x11b0   :  { %v2086_v39 = vadd.f32 1e-06, %v2084_v62  ;;  %v2081_v2 = vsel %vm35_vm0, %v2077_v0, 0.0 }
0x11b1   :  { %2082 = vadd.xlane.f32.xlu1 %v2081_v2 }
0x11b2   :  { %2709 = vrsqrt.f32 %v2086_v39 }
0x11bc   :  { %v2710_v3 = vpop.eup %2709 }
0x11bd   :  { %v2090_v4 = vmul.f32 %v2710_v3, %v2074_v49 }
0x11bf   :  { %v2096_v11 = vmul.f32 %v2386_v7, %v2090_v4 }
0x11c1   :  { %v2102_v12 = vadd.f32 %v2387_v6, %v2096_v11 }
0x11c3   :  { %2605 = vmatprep.mubr.msk.f32.mxu0 %vm35_vm0, %v2102_v12 }
0x123e   :  { %v2083_v29 = vpop.xlane.xlu1 %2082 }
0x123f   :  { %v2085_v30 = vmul.f32 0.03125, %v2083_v29 }
0x1241   :  { %v2087_v31 = vadd.f32 1e-06, %v2085_v30 }
0x1243   :  { %2711 = vrsqrt.f32 %v2087_v31 }
0x124d   :  { %v2712_v26 = vpop.eup %2711 }
0x124e   :  { %v2091_v32 = vmul.f32 %v2712_v26, %v2075_v60 }
0x1250   :  { %v2097_v33 = vmul.f32 %v2386_v7, %v2091_v32 }
0x1252   :  { %v2103_v34 = vadd.f32 %v2387_v6, %v2097_v33 }
0x1254   :  { %2606 = vmatmul.mubr.msk.f32.vlgmr.msra.gmra.mrb[26].mxu0 %vm35_vm0, %v2103_v34 }
0x1327   :  { %v2607_v41 = vpop.f32.mrb[26].mxu0 }
0x1328   :  { %v2190_v42 = vadd.f32 %v2607_v41, %v2388_v40  ;;  %v2184_v5 = vpop.f32.mrb[27].mxu0 }
0x1329   :  { %v2185_v43 = vadd.f32 %v2388_v40, %v2184_v5 }
0x132a   :  { %v2194_v46 = vmax.f32 %v2190_v42, 0.0 }
0x132b   :  { %v2193_v45 = vmax.f32 %v2185_v43, 0.0 }
0x132d   :  { %2624 = vmatprep.mubr.msk.f32.mxu1 %vm2207_vm3, %v2193_v45 }
0x132e   :  { %2625 = vmatmul.mubr.msk.f32.vlgmr.msra.gmra.mrb[24].mxu1 %vm2207_vm3, %v2194_v46 }
0x1401   :  { %v2626_v48 = vpop.f32.mrb[24].mxu1 }
0x1402   :  { %v2280_v9 = vpop.f32.mrb[25].mxu1  ;;  %v2286_v49 = vadd.f32 %v2626_v48, %v2391_v47 }
0x1403   :  { %v2281_v50 = vadd.f32 %v2391_v47, %v2280_v9 }
0x1404   :  { %v2290_v53 = vadd.f32 %v2286_v49, %v2103_v34 }
0x1405   :  { %v2289_v51 = vadd.f32 %v2281_v50, %v2102_v12 }
0x1406   :  { %v2294_v54 = vsel %vm35_vm0, %v2290_v53, 0.0 }
0x1407   :  { %v2291_v52 = vsel %vm35_vm0, %v2289_v51, 0.0 }
0x1408   :  { %2292 = vadd.xlane.f32.xlu1 %v2291_v52 }
0x140c   :  { %2295 = vadd.xlane.f32.xlu1 %v2294_v54 }
0x1495   :  { %v2293_v56 = vpop.xlane.xlu1 %2292 }
0x1496   :  { %v2297_v57 = vmul.f32 0.03125, %v2293_v56 }
0x1498   :  { %v2299_v59 = vsub.f32 %v2289_v51, %v2297_v57 }
0x1499   :  { %v2296_v60 = vpop.xlane.xlu1 %2295 }
0x149a   :  { %v2298_v61 = vmul.f32 0.03125, %v2296_v60  ;;  %v2301_v62 = vmul.f32 %v2299_v59, %v2299_v59 }
0x149c   :  { %v2300_v0 = vsub.f32 %v2290_v53, %v2298_v61  ;;  %v2303_v39 = vsel %vm35_vm0, %v2301_v62, 0.0 }
0x149d   :  { %2304 = vadd.xlane.f32.xlu0 %v2303_v39 }
0x149e   :  { %v2302_v2 = vmul.f32 %v2300_v0, %v2300_v0 }
0x14a0   :  { %v2306_v3 = vsel %vm35_vm0, %v2302_v2, 0.0 }
0x14a1   :  { %2307 = vadd.xlane.f32.xlu1 %v2306_v3 }
0x14b2   :  { %1075 = vrot.lane.b32.xlu1 %v2883_v38, %s2754_s4 }
0x14b3   :  { %2046 = vrot.lane.b32.xlu0 %v3030_v21, %s2755_s6 }
0x14b6   :  { %2043 = vrot.lane.b32.xlu1 %v2999_v58, %s2754_s4 }
0x14ba   :  { %1078 = vrot.lane.b32.xlu1 %v2919_v63, %s2755_s6  ;;  %v2394_v63 = vld [vmem:[%s3163_s5 + $0x2] ss:$0 sm:$0xff] }
0x14be   :  { %1081 = vrot.lane.b32.xlu1 %v2949_v23, %s2756_s0  ;;  %v2395_v23 = vld [vmem:[%s3163_s5 + $0x3] ss:$0 sm:$0xff] }
0x14c2   :  { %2049 = vrot.lane.b32.xlu1 %v3052_v44, %s2756_s0 }
0x152a   :  { %v2305_v7 = vpop.xlane.xlu0 %2304 }
0x152b   :  { %v2309_v4 = vmul.f32 0.03125, %v2305_v7 }
0x152d   :  { %v2311_v6 = vadd.f32 1e-06, %v2309_v4 }
0x152e   :  { %v2308_v11 = vpop.xlane.xlu1 %2307 }
0x152f   :  { %2713 = vrsqrt.f32 %v2311_v6  ;;  %v2310_v12 = vmul.f32 0.03125, %v2308_v11 }
0x1531   :  { %v2312_v38 = vadd.f32 1e-06, %v2310_v12 }
0x1532   :  { %v1076_v13 = vpop.permute.xlu1 %1075 }
0x1533   :  { %2715 = vrsqrt.f32 %v2312_v38  ;;  %v1084_v16 = vsel %vm124_vm2, %v2877_v35, %v1076_v13  ;;  %v2047_v35 = vpop.permute.xlu0 %2046 }
0x1536   :  { %v2044_v21 = vpop.permute.xlu1 %2043 }
0x1537   :  { %v2052_v20 = vsel %vm124_vm2, %v2993_v55, %v2044_v21 }
0x1538   :  { %v2053_v25 = vsel %vm1085_vm5, %v2052_v20, %v2047_v35 }
0x1539   :  { %v2714_v14 = vpop.eup %2713 }
0x153a   :  { %v2315_v58 = vmul.f32 %v2714_v14, %v2299_v59  ;;  %v1079_v1 = vpop.permute.xlu1 %1078 }
0x153b   :  { %v1086_v18 = vsel %vm1085_vm5, %v1084_v16, %v1079_v1 }
0x153c   :  { %v2321_v44 = vmul.f32 %v2394_v63, %v2315_v58 }
0x153d   :  { %v2716_v15 = vpop.eup %2715 }
0x153e   :  { %v2316_v17 = vmul.f32 %v2716_v15, %v2300_v0  ;;  %v1082_v10 = vpop.permute.xlu1 %1081  ;;  %v2327_v19 = vadd.f32 %v2395_v23, %v2321_v44 }
0x153f   :  { %v1088_v22 = vsel %vm1087_vm4, %v1086_v18, %v1082_v10 }
0x1540   :  { %1089 = vst.msk [vmem:[%s3166_s8] sm:$0xff] %vm35_vm0, %v1088_v22  ;;  %v2322_v24 = vmul.f32 %v2394_v63, %v2316_v17  ;;  %2329 = vst.msk [vmem:[#allocation2] sm:$0xff] %vm35_vm0, %v2327_v19 }
0x1542   :  { %v2050_v27 = vpop.permute.xlu1 %2049  ;;  %v2328_v28 = vadd.f32 %v2395_v23, %v2322_v24 }
0x1543   :  { %v2054_v29 = vsel %vm1087_vm4, %v2053_v25, %v2050_v27 }
0x1544   :  { %2385 = vst.msk [vmem:[%s3166_s8 + $0x8] sm:$0xff] %vm35_vm0, %v2054_v29  ;;  %2330 = vst.msk [vmem:[#allocation2 + $0x8] sm:$0xff] %vm35_vm0, %v2328_v28 }
0x1545   :  { %2728 = shalt.err (!%p2725_p4)
}
0x1546   :  { %s2729_s28 = scalar_lea.hbm %s3165_s7, 256 }
0x1547   :  { %p2730_p5 = scmp.ne.s32.totalorder %s3165_s7, %s2729_s28  ;;  %p2733_p6 = scmp.lt.u32.totalorder %s2729_s28, %s3165_s7 }
0x1549   :  { %p2735_p7 = pnand %p2733_p6, %p2730_p5 }
0x154b   :  { %2738 = shalt.err (!%p2735_p7)
}
0x154c   :  { %s2758_s8 = smov 128  }
0x154d   :  { %2342 = dma.vmem_to_hbm [thread:$0]  %s2337_s21, 256, %s3165_s7, [#allocation3], %s2758_s8, %s2758_s8, %s2754_s4  }
0x154e   :  { %2739 = dma.done.wait [#allocation3], 256  }
0x154f   :  { %2740 = vsyncadd [#allocation3], 4294967040 }
0x1550   :  { %2350 = vsyncpa [#allocation3], 1 }

</bundles_post_ra>
